<compile_context>
chip_gen: v5e
topology: v5e:2x2
jax: 0.10.0
libtpu: 0.0.40
codegen_flags: <defaults>
</compile_context>

<pallas_src>
import functools

import jax
import jax.numpy as jnp
from jax.experimental import pallas as pl
from jax.experimental.pallas import tpu as pltpu

_LANE = 128      # vreg lane width (last dim)
_SUBLANE = 8     # vreg sublane count (second-to-last dim)


def _round_up(x: int, m: int) -> int:
    return ((x + m - 1) // m) * m


def _pad2d(a, rows: int, cols: int):
    r, c = a.shape
    if (r, c) == (rows, cols):
        return a
    return jnp.pad(a, ((0, rows - r), (0, cols - c)))


def _policy_net_kernel(x_ref, w1_ref, b1_ref, w2_ref, b2_ref, w3_ref, b3_ref,
                       out_ref):
    """One batch tile: fused 3-layer MLP (bf16 MXU, f32 accum) + softmax."""
    mm_dtype = w1_ref.dtype                      # bf16 matmul inputs
    x = x_ref[...].astype(mm_dtype)

    h1 = jnp.tanh(
        jnp.dot(x, w1_ref[...], preferred_element_type=jnp.float32)
        + b1_ref[...])
    h2 = jnp.tanh(
        jnp.dot(h1.astype(mm_dtype), w2_ref[...],
                preferred_element_type=jnp.float32) + b2_ref[...])
    logits = (jnp.dot(h2.astype(mm_dtype), w3_ref[...],
                      preferred_element_type=jnp.float32) + b3_ref[...])

    # softmax along dim=1 (lane axis).  Exact divide so rows sum to 1.
    m = jnp.max(logits, axis=1, keepdims=True)
    e = jnp.exp(logits - m)
    denom = jnp.sum(e, axis=1, keepdims=True)
    out_ref[...] = (e / denom).astype(out_ref.dtype)


def prepare_params(params, matmul_dtype=jnp.bfloat16):
    """Pad hidden dims to 128 lanes and cast weights ONCE (outside hot path).

    Call at init / after each parameter update, not per forward.
    """
    w1, b1, w2, b2, w3, b3 = params
    input_dim, hidden_dim = w1.shape
    output_dim = w3.shape[1]
    h_pad = _round_up(hidden_dim, _LANE)
    return (
        _pad2d(w1, input_dim, h_pad).astype(matmul_dtype),
        _pad2d(b1, 1, h_pad).astype(jnp.float32),
        _pad2d(w2, h_pad, h_pad).astype(matmul_dtype),
        _pad2d(b2, 1, h_pad).astype(jnp.float32),
        _pad2d(w3, h_pad, output_dim).astype(matmul_dtype),
        _pad2d(b3, 1, output_dim).astype(jnp.float32),
    )


@functools.partial(jax.jit, static_argnames=("block_batch",))
def policy_net_forward(obs, prepared_params, block_batch: int = 1024):
    """Forward pass: stream batch tiles; weights stay VMEM-resident."""
    w1, b1, w2, b2, w3, b3 = prepared_params
    batch, input_dim = obs.shape
    h_pad = w1.shape[1]
    output_dim = w3.shape[1]

    # Batch padded only to a sublane multiple; ragged last tile handled by
    # Pallas (OOB writes masked).
    b_pad = _round_up(max(batch, 1), _SUBLANE)
    # Big enough to amortize per-step overhead, but keep >=2 grid steps on
    # mid-size batches so both v7x TensorCores get work.
    tb = min(block_batch, _round_up(pl.cdiv(b_pad, 2), _SUBLANE))
    grid = (pl.cdiv(b_pad, tb),)

    obs_p = _pad2d(obs.astype(jnp.float32), b_pad, input_dim)

    # Advisory cost estimate for XLA scheduling around the custom call.
    flops = 2 * b_pad * (input_dim * h_pad + h_pad * h_pad + h_pad * output_dim)
    transcendentals = b_pad * (2 * h_pad + output_dim)       # tanh x2 + exp
    bytes_accessed = (4 * b_pad * (input_dim + output_dim)
                      + w1.dtype.itemsize * (input_dim * h_pad
                                             + h_pad * h_pad
                                             + h_pad * output_dim)
                      + 4 * (2 * h_pad + output_dim))
    cost = pl.CostEstimate(flops=flops,
                           transcendentals=transcendentals,
                           bytes_accessed=bytes_accessed)

    weight_spec = lambda shape: pl.BlockSpec(shape, lambda i: (0, 0))
    out_p = pl.pallas_call(
        _policy_net_kernel,
        out_shape=jax.ShapeDtypeStruct((b_pad, output_dim), jnp.float32),
        grid=grid,
        in_specs=[
            pl.BlockSpec((tb, input_dim), lambda i: (i, 0)),  # obs (streamed)
            weight_spec((input_dim, h_pad)),                  # w1 (resident)
            weight_spec((1, h_pad)),                          # b1
            weight_spec((h_pad, h_pad)),                      # w2
            weight_spec((1, h_pad)),                          # b2
            weight_spec((h_pad, output_dim)),                 # w3
            weight_spec((1, output_dim)),                     # b3
        ],
        out_specs=pl.BlockSpec((tb, output_dim), lambda i: (i, 0)),
        compiler_params=pltpu.CompilerParams(
            dimension_semantics=("parallel",)),
        cost_estimate=cost,
    )(obs_p, w1, b1, w2, b2, w3, b3)

    # Only the (tiny) batch padding needs slicing off.
    return out_p[:batch]


def init_params(key, input_dim, hidden_dim, output_dim):
    """PyTorch nn.Linear default init: U(-1/sqrt(fan_in), 1/sqrt(fan_in))."""
    def linear(key, fan_in, fan_out):
        kw, kb = jax.random.split(key)
        bound = float(fan_in) ** -0.5
        w = jax.random.uniform(kw, (fan_in, fan_out), jnp.float32,
                               minval=-bound, maxval=bound)
        b = jax.random.uniform(kb, (1, fan_out), jnp.float32,
                               minval=-bound, maxval=bound)
        return w, b

    k1, k2, k3 = jax.random.split(key, 3)
    w1, b1 = linear(k1, input_dim, hidden_dim)
    w2, b2 = linear(k2, hidden_dim, hidden_dim)
    w3, b3 = linear(k3, hidden_dim, output_dim)
    return (w1, b1, w2, b2, w3, b3)


def reference_forward(obs, params, matmul_dtype=jnp.float32):
    """Pure-JAX reference (optionally with bf16 matmul inputs, like kernel)."""
    w1, b1, w2, b2, w3, b3 = params

    def dense(x, w, b):
        return jnp.dot(x.astype(matmul_dtype), w.astype(matmul_dtype),
                       preferred_element_type=jnp.float32) + b

    h1 = jnp.tanh(dense(obs, w1, b1))
    h2 = jnp.tanh(dense(h1, w2, b2))
    return jax.nn.softmax(dense(h2, w3, b3), axis=1)


if __name__ == "__main__":
    # CartPole-like sizes: 4-dim observation, 32 hidden units, 2 actions.
    input_dim, hidden_dim, output_dim = 4, 32, 2

    key = jax.random.PRNGKey(0)
    k_params, k_obs1, k_obs2 = jax.random.split(key, 3)
    params = init_params(k_params, input_dim, hidden_dim, output_dim)
    prepared = prepare_params(params)          # pad + cast once, off hot path

    # Case 1: tiny acting batch (B=2) — exercises batch sublane padding.
    obs_small = jax.random.normal(k_obs1, (2, input_dim), dtype=jnp.float32)
    out_small = jax.block_until_ready(policy_net_forward(obs_small, prepared))
    ref_small = reference_forward(obs_small, params, jnp.bfloat16)
    assert out_small.shape == (2, output_dim)
    assert jnp.allclose(out_small, ref_small, atol=2e-3, rtol=2e-3), \
        "small-batch mismatch vs (bf16-matmul) reference"
    assert jnp.allclose(jnp.sum(out_small, axis=1), jnp.ones((2,)), atol=1e-5)
    # Looser sanity check against the full-f32 reference (bf16 matmul inputs).
    assert jnp.allclose(out_small, reference_forward(obs_small, params),
                        atol=5e-2), "small-batch drifted too far from f32 ref"

    # Case 2: rollout-sized batch (not a multiple of 8 or of the tile) —
    # exercises the cdiv grid, ragged last tile, resident weights, megacore.
    big_batch = 1030
    obs_big = jax.random.normal(k_obs2, (big_batch, input_dim),
                                dtype=jnp.float32)
    out_big = jax.block_until_ready(policy_net_forward(obs_big, prepared))
    ref_big = reference_forward(obs_big, params, jnp.bfloat16)
    assert out_big.shape == (big_batch, output_dim)
    assert jnp.allclose(out_big, ref_big, atol=2e-3, rtol=2e-3), \
        "large-batch mismatch vs (bf16-matmul) reference"
    assert jnp.allclose(jnp.sum(out_big, axis=1), jnp.ones((big_batch,)),
                        atol=1e-5)

    print("KERNEL_OK")
</pallas_src>

<mosaic_0001>
module attributes {stable_mosaic.version = 11 : i64} {
  func.func @_policy_net_kernel(%arg0: i32, %arg1: memref<8x4xf32, #tpu.memory_space<vmem>>, %arg2: memref<4x128xbf16, #tpu.memory_space<vmem>>, %arg3: memref<1x128xf32, #tpu.memory_space<vmem>>, %arg4: memref<128x128xbf16, #tpu.memory_space<vmem>>, %arg5: memref<1x128xf32, #tpu.memory_space<vmem>>, %arg6: memref<128x2xbf16, #tpu.memory_space<vmem>>, %arg7: memref<1x2xf32, #tpu.memory_space<vmem>>, %arg8: memref<8x2xf32, #tpu.memory_space<vmem>>) attributes {dimension_semantics = [#tpu.dimension_semantics<parallel>], iteration_bounds = array<i64: 1>, scalar_prefetch = 0 : i64, scratch_operands = 0 : i64, tpu.core_type = #tpu.core_type<tc>, window_params = [{transform_indices = @transform_0, window_bounds = array<i64: 8, 4>}, {pipeline_mode = #tpu.pipeline_mode<synchronous>, transform_indices = @transform_1, window_bounds = array<i64: 4, 128>}, {pipeline_mode = #tpu.pipeline_mode<synchronous>, transform_indices = @transform_2, window_bounds = array<i64: 1, 128>}, {pipeline_mode = #tpu.pipeline_mode<synchronous>, transform_indices = @transform_3, window_bounds = array<i64: 128, 128>}, {pipeline_mode = #tpu.pipeline_mode<synchronous>, transform_indices = @transform_4, window_bounds = array<i64: 1, 128>}, {pipeline_mode = #tpu.pipeline_mode<synchronous>, transform_indices = @transform_5, window_bounds = array<i64: 128, 2>}, {pipeline_mode = #tpu.pipeline_mode<synchronous>, transform_indices = @transform_6, window_bounds = array<i64: 1, 2>}, {transform_indices = @transform_7, window_bounds = array<i64: 8, 2>}]} {
    %c0 = arith.constant 0 : index
    %c0_0 = arith.constant 0 : index
    %0 = vector.load %arg1[%c0, %c0_0] : memref<8x4xf32, #tpu.memory_space<vmem>>, vector<8x4xf32>
    %1 = arith.truncf %0 : vector<8x4xf32> to vector<8x4xbf16>
    %c0_1 = arith.constant 0 : index
    %c0_2 = arith.constant 0 : index
    %2 = vector.load %arg2[%c0_1, %c0_2] : memref<4x128xbf16, #tpu.memory_space<vmem>>, vector<4x128xbf16>
    %cst = arith.constant dense<0.000000e+00> : vector<8x128xf32>
    %3 = tpu.matmul %1, %2, %cst {dimension_numbers = #tpu.dot_dimension_numbers<[1], [0], [0], [1], [0, 0, 1, 1], [], []>} : vector<8x4xbf16>, vector<4x128xbf16>, vector<8x128xf32> -> vector<8x128xf32>
    %c0_3 = arith.constant 0 : index
    %c0_4 = arith.constant 0 : index
    %4 = vector.load %arg3[%c0_3, %c0_4] : memref<1x128xf32, #tpu.memory_space<vmem>>, vector<1x128xf32>
    %5 = vector.broadcast %4 : vector<1x128xf32> to vector<8x128xf32>
    %6 = arith.addf %3, %5 : vector<8x128xf32>
    %7 = math.tanh %6 : vector<8x128xf32>
    %8 = arith.truncf %7 : vector<8x128xf32> to vector<8x128xbf16>
    %c0_5 = arith.constant 0 : index
    %c0_6 = arith.constant 0 : index
    %9 = vector.load %arg4[%c0_5, %c0_6] : memref<128x128xbf16, #tpu.memory_space<vmem>>, vector<128x128xbf16>
    %cst_7 = arith.constant dense<0.000000e+00> : vector<8x128xf32>
    %10 = tpu.matmul %8, %9, %cst_7 {dimension_numbers = #tpu.dot_dimension_numbers<[1], [0], [0], [1], [0, 0, 1, 1], [], []>} : vector<8x128xbf16>, vector<128x128xbf16>, vector<8x128xf32> -> vector<8x128xf32>
    %c0_8 = arith.constant 0 : index
    %c0_9 = arith.constant 0 : index
    %11 = vector.load %arg5[%c0_8, %c0_9] : memref<1x128xf32, #tpu.memory_space<vmem>>, vector<1x128xf32>
    %12 = vector.broadcast %11 : vector<1x128xf32> to vector<8x128xf32>
    %13 = arith.addf %10, %12 : vector<8x128xf32>
    %14 = math.tanh %13 : vector<8x128xf32>
    %15 = arith.truncf %14 : vector<8x128xf32> to vector<8x128xbf16>
    %c0_10 = arith.constant 0 : index
    %c0_11 = arith.constant 0 : index
    %16 = vector.load %arg6[%c0_10, %c0_11] : memref<128x2xbf16, #tpu.memory_space<vmem>>, vector<128x2xbf16>
    %cst_12 = arith.constant dense<0.000000e+00> : vector<8x2xf32>
    %17 = tpu.matmul %15, %16, %cst_12 {dimension_numbers = #tpu.dot_dimension_numbers<[1], [0], [0], [1], [0, 0, 1, 1], [], []>} : vector<8x128xbf16>, vector<128x2xbf16>, vector<8x2xf32> -> vector<8x2xf32>
    %c0_13 = arith.constant 0 : index
    %c0_14 = arith.constant 0 : index
    %18 = vector.load %arg7[%c0_13, %c0_14] : memref<1x2xf32, #tpu.memory_space<vmem>>, vector<1x2xf32>
    %19 = vector.broadcast %18 : vector<1x2xf32> to vector<8x2xf32>
    %20 = arith.addf %17, %19 : vector<8x2xf32>
    %cst_15 = arith.constant dense<0xFF800000> : vector<8xf32>
    %21 = vector.multi_reduction <maximumf>, %20, %cst_15 [1] : vector<8x2xf32> to vector<8xf32>
    %22 = vector.shape_cast %21 : vector<8xf32> to vector<8x1xf32>
    %23 = vector.broadcast %22 : vector<8x1xf32> to vector<8x2xf32>
    %24 = arith.subf %20, %23 : vector<8x2xf32>
    %25 = math.exp %24 : vector<8x2xf32>
    %cst_16 = arith.constant dense<0.000000e+00> : vector<8xf32>
    %26 = vector.multi_reduction <add>, %25, %cst_16 [1] : vector<8x2xf32> to vector<8xf32>
    %27 = vector.shape_cast %26 : vector<8xf32> to vector<8x1xf32>
    %28 = vector.broadcast %27 : vector<8x1xf32> to vector<8x2xf32>
    %29 = arith.divf %25, %28 : vector<8x2xf32>
    %c0_17 = arith.constant 0 : index
    %c0_18 = arith.constant 0 : index
    %30 = vector.load %arg8[%c0_17, %c0_18] : memref<8x2xf32, #tpu.memory_space<vmem>>, vector<8x2xf32>
    tpu.vector_store %arg8[%c0_17, %c0_18], %29 {strides = array<i32>} : memref<8x2xf32, #tpu.memory_space<vmem>>, vector<8x2xf32>,
    return
  }
  func.func @transform_0(%arg0: i32) -> (i32, i32) {
    %c0_i32 = arith.constant 0 : i32
    %c0_i32_0 = arith.constant 0 : i32
    return %arg0, %c0_i32 : i32, i32
  }
  func.func @transform_1(%arg0: i32) -> (i32, i32) {
    %c0_i32 = arith.constant 0 : i32
    %c0_i32_0 = arith.constant 0 : i32
    %c0_i32_1 = arith.constant 0 : i32
    return %c0_i32, %c0_i32_0 : i32, i32
  }
  func.func @transform_2(%arg0: i32) -> (i32, i32) {
    %c0_i32 = arith.constant 0 : i32
    %c0_i32_0 = arith.constant 0 : i32
    %c0_i32_1 = arith.constant 0 : i32
    return %c0_i32, %c0_i32_0 : i32, i32
  }
  func.func @transform_3(%arg0: i32) -> (i32, i32) {
    %c0_i32 = arith.constant 0 : i32
    %c0_i32_0 = arith.constant 0 : i32
    %c0_i32_1 = arith.constant 0 : i32
    return %c0_i32, %c0_i32_0 : i32, i32
  }
  func.func @transform_4(%arg0: i32) -> (i32, i32) {
    %c0_i32 = arith.constant 0 : i32
    %c0_i32_0 = arith.constant 0 : i32
    %c0_i32_1 = arith.constant 0 : i32
    return %c0_i32, %c0_i32_0 : i32, i32
  }
  func.func @transform_5(%arg0: i32) -> (i32, i32) {
    %c0_i32 = arith.constant 0 : i32
    %c0_i32_0 = arith.constant 0 : i32
    %c0_i32_1 = arith.constant 0 : i32
    return %c0_i32, %c0_i32_0 : i32, i32
  }
  func.func @transform_6(%arg0: i32) -> (i32, i32) {
    %c0_i32 = arith.constant 0 : i32
    %c0_i32_0 = arith.constant 0 : i32
    %c0_i32_1 = arith.constant 0 : i32
    return %c0_i32, %c0_i32_0 : i32, i32
  }
  func.func @transform_7(%arg0: i32) -> (i32, i32) {
    %c0_i32 = arith.constant 0 : i32
    %c0_i32_0 = arith.constant 0 : i32
    return %arg0, %c0_i32 : i32, i32
  }
}

</mosaic_0001>

<bundles_post_ra>
// kernel: policy_net_forward.1
= control target key start
LH: loop header
LB: loop body
LE: loop exit
PB: predicated region body
PF: predicated region fallthrough
CT: control target
= control target key end

     0   :  { %vm38_vm0 = vcmask 1041408   ;;  %vm34_vm1 = vcmask 31744   ;;  %vm221_vm2 = vcmask 15360   ;;  %s452_s1 = inlined_call_operand.vmem [shape: bf16[4,128], index: 1, kind: input, shape index: {}]   ;;  %s453_s0 = inlined_call_operand.vmem [shape: f32[8,4], index: 0, kind: input, shape index: {}]   ;;  %s454_s3 = inlined_call_operand.vmem [shape: bf16[128,128], index: 3, kind: input, shape index: {}]   ;;  %s455_s2 = inlined_call_operand.vmem [shape: f32[1,128], index: 2, kind: input, shape index: {}]   ;;  %s456_s4 = inlined_call_operand.vmem [shape: f32[1,128], index: 4, kind: input, shape index: {}]   ;;  %s457_s5 = inlined_call_operand.vmem [shape: bf16[128,2], index: 5, kind: input, shape index: {}]   ;;  %s458_s6 = inlined_call_operand.vmem [shape: f32[1,2], index: 6, kind: input, shape index: {}]   ;;  %s459_s7 = inlined_call_operand.vmem [shape: f32[8,2], index: 7, kind: output, shape index: {}]  }
   0x1   :  { %v29_v0 = vld [vmem:[%s452_s1] sm:$0x3]  ;;  %v323_v2 = vld [vmem:[%s454_s3 + $0x38] sm:$0xff]  ;;  %v322_v5 = vld [vmem:[%s454_s3 + $0x30] sm:$0xff] }
   0x2   :  { %v27_v1 = vld [vmem:[%s453_s0] sm:$0xff]  ;;  %v40_v3 = vsel %vm38_vm0, %v29_v0, 0  ;;  %125 = vmatpush.bf16.msra.mxu1 %v323_v2  ;;  %v321_v6 = vld [vmem:[%s454_s3 + $0x28] sm:$0xff]  ;;  %v319_v8 = vld [vmem:[%s454_s3 + $0x18] sm:$0xff] }
   0x3   :  { %v28_v4 = vpack.c.bf16 %v27_v1, %v27_v1  ;;  %49 = vmatpush.bf16.msra.mxu0 %v40_v3  ;;  %v320_v7 = vld [vmem:[%s454_s3 + $0x20] sm:$0xff]  ;;  %v318_v9 = vld [vmem:[%s454_s3 + $0x10] sm:$0xff]  ;;  %v317_v10 = vld [vmem:[%s454_s3 + $0x8] sm:$0xff] }
   0x4   :  { %v316_v11 = vld [vmem:[%s454_s3] sm:$0xff]  ;;  %v331_v12 = vld [vmem:[%s457_s5 + $0x38] sm:$0xff]  ;;  %v330_v13 = vld [vmem:[%s457_s5 + $0x30] sm:$0xff] }
   0x5   :  { %208 = vmatpush.bf16.msra.mxu2 %v331_v12  ;;  %v329_v14 = vld [vmem:[%s457_s5 + $0x28] sm:$0xff]  ;;  %v328_v15 = vld [vmem:[%s457_s5 + $0x20] sm:$0xff]  ;;  %v327_v16 = vld [vmem:[%s457_s5 + $0x18] sm:$0xff] }
   0x6   :  { %251 = vmatmul.msk.bf16.vlgmr.msra.gmra.mxu0 %vm34_vm1, %v28_v4  ;;  %126 = vmatpush.bf16.msra.mxu1 %v322_v5  ;;  %v332_v17 = vld [vmem:[%s455_s2] ss:$0 sm:$0xff]  ;;  %v326_v23 = vld [vmem:[%s457_s5 + $0x10] sm:$0xff]  ;;  %v325_v24 = vld [vmem:[%s457_s5 + $0x8] sm:$0xff] }
   0x7   :  { %v324_v25 = vld [vmem:[%s457_s5] sm:$0xff] }
   0x8   :  { %v333_v26 = vld [vmem:[%s456_s4] ss:$0 sm:$0xff] }
   0x9   :  { %209 = vmatpush.bf16.msra.mxu2 %v330_v13  ;;  %v334_v32 = vld [vmem:[%s458_s6] ss:$0 sm:$0xff] }
   0xa   :  { %127 = vmatpush.bf16.msra.mxu1 %v321_v6 }
   0xd   :  { %210 = vmatpush.bf16.msra.mxu2 %v329_v14 }
   0xe   :  { %128 = vmatpush.bf16.msra.mxu1 %v320_v7 }
  0x11   :  { %211 = vmatpush.bf16.msra.mxu2 %v328_v15 }
  0x12   :  { %129 = vmatpush.bf16.msra.mxu1 %v319_v8 }
  0x15   :  { %212 = vmatpush.bf16.msra.mxu2 %v327_v16 }
  0x16   :  { %130 = vmatpush.bf16.msra.mxu1 %v318_v9 }
  0x19   :  { %213 = vmatpush.bf16.msra.mxu2 %v326_v23 }
  0x1a   :  { %131 = vmatpush.bf16.msra.mxu1 %v317_v10 }
  0x1d   :  { %214 = vmatpush.bf16.msra.mxu2 %v325_v24 }
  0x1e   :  { %132 = vmatpush.bf16.msra.mxu1 %v316_v11 }
  0x21   :  { %215 = vmatpush.bf16.msra.mxu2 %v324_v25 }
  0x83   :  { %v51_v18 = vpop.f32.mrf.mxu0 }
  0x84   :  { %v52_v19 = vadd.f32 %v332_v17, %v51_v18 }
  0x86   :  { %335 = vtanh.f32 %v52_v19 }
  0x8b   :  { %v53_v20 = vpop.f32.mrf.mxu0 }
  0x8c   :  { %v336_v21 = vpop.eup %335 }
  0x8d   :  { %v56_v22 = vpack.c.bf16 %v336_v21, %v336_v21 }
  0x8f   :  { %133 = vmatmul.bf16.vlgmr.msra.gmra.mxu1 %v56_v22 }
 0x10c   :  { %v134_v27 = vpop.f32.mrf.mxu1 }
 0x10d   :  { %v135_v28 = vadd.f32 %v333_v26, %v134_v27 }
 0x10f   :  { %337 = vtanh.f32 %v135_v28 }
 0x114   :  { %v136_v29 = vpop.f32.mrf.mxu1 }
 0x115   :  { %v338_v30 = vpop.eup %337 }
 0x116   :  { %v139_v31 = vpack.c.bf16 %v338_v30, %v338_v30 }
 0x118   :  { %216 = vmatmul.bf16.vlgmr.msra.gmra.mxu2 %v139_v31 }
 0x19b   :  { %v217_v33 = vpop.f32.mrf.mxu2 }
 0x19c   :  { %v218_v34 = vadd.f32 %v334_v32, %v217_v33 }
 0x19e   :  { %v222_v35 = vsel %vm221_vm2, %v218_v34, -inf }
 0x19f   :  { %223 = vmax.xlane.f32.xlu0 %v222_v35 }
 0x1a3   :  { %v219_v36 = vpop.f32.mrf.mxu2 }
 0x212   :  { %v224_v37 = vpop.xlane.xlu0 %223 }
 0x213   :  { %v225_v38 = vsub.f32 %v218_v34, %v224_v37 }
 0x215   :  { %v226_v39 = vmul.f32 1.442695, %v225_v38 }
 0x217   :  { %339 = vpow2.f32 %v226_v39 }
 0x21d   :  { %v340_v40 = vpop.eup %339 }
 0x21e   :  { %v228_v41 = vsel %vm221_vm2, %v340_v40, 0.0 }
 0x21f   :  { %229 = vadd.xlane.f32.xlu0 %v228_v41 }
 0x292   :  { %v230_v42 = vpop.xlane.xlu0 %229 }
 0x293   :  { %341 = vrcp.f32 %v230_v42  ;;  %v242_v46 = vand.u32 2147483648, %v230_v42  ;;  %v240_v48 = vand.u32 2147483647, %v230_v42  ;;  %vm236_vm4 = vweird.f32 %v230_v42 }
 0x295   :  { %v243_v50 = vor.u32 1.1754944e-38, %v242_v46  ;;  %vm241_vm6 = vcmp.eq.f32.partialorder %v240_v48, 8.507059e+37 }
 0x299   :  { %v342_v43 = vpop.eup %341 }
 0x29a   :  { %v232_v44 = vmul.f32 %v342_v43, %v230_v42  ;;  %vm237_vm3 = vweird.f32 %v342_v43 }
 0x29b   :  { %vm238_vm5 = vmor %vm236_vm4, %vm237_vm3 }
 0x29c   :  { %v233_v45 = vsub.f32 1.0, %v232_v44 }
 0x29e   :  { %v234_v47 = vmul.f32 %v342_v43, %v233_v45 }
 0x2a0   :  { %v235_v49 = vadd.f32 %v342_v43, %v234_v47 }
 0x2a2   :  { %v239_v51 = vsel %vm238_vm5, %v342_v43, %v235_v49 }
 0x2a3   :  { %v244_v52 = vsel %vm241_vm6, %v243_v50, %v239_v51 }
 0x2a4   :  { %v245_v53 = vmul.f32 %v340_v40, %v244_v52 }
 0x2a6   :  { %246 = vst.msk [vmem:[%s459_s7] sm:$0xff] %vm221_vm2, %v245_v53 }

</bundles_post_ra>
